<compile_context>
chip_gen: v5e
topology: v5e:2x2
jax: 0.10.0
libtpu: 0.0.40
codegen_flags: <defaults>
</compile_context>

<pallas_src>
import math
from functools import partial

import jax
import jax.numpy as jnp
from jax import lax
from jax.experimental import pallas as pl
from jax.experimental.pallas import tpu as pltpu


_GELU_C = math.sqrt(2.0 / math.pi)


def _layernorm(x, scale, shift, eps=1e-5):
    # x: (T, E) f32; scale/shift: (1, E) f32.  Population variance (unbiased=False).
    mean = jnp.mean(x, axis=-1, keepdims=True)
    xc = x - mean
    var = jnp.mean(xc * xc, axis=-1, keepdims=True)
    return xc * lax.rsqrt(var + eps) * scale + shift


def _gelu(x):
    # tanh-approximate GELU: matches the reference GELU module exactly.
    return 0.5 * x * (1.0 + jnp.tanh(_GELU_C * (x + 0.044715 * x * x * x)))


def transformer_block_kernel(
    x_ref,                      # (T, E) f32  -- one batch element per grid step
    wqkv_ref,                   # (E, 3E) bf16, fused [Wq | Wk | Wv]
    wo_h_ref,                   # (NH, hd, E) bf16, Wo split per head along K
    bo_ref,                     # (1, E) f32
    w1_ref, b1_ref,             # (E, 4E) bf16, (1, 4E) f32
    w2_ref, b2_ref,             # (4E, E) bf16, (1, E) f32
    ln1_s_ref, ln1_b_ref,
    ln2_s_ref, ln2_b_ref,       # (1, E) f32 each
    out_ref,                    # (T, E)
    *, num_heads, ffn_act_dtype,
):
    x = x_ref[...]                                   # (T, E) f32
    T, E = x.shape
    hd = E // num_heads
    scale = 1.0 / math.sqrt(hd)

    # ---- Sub-block 1: LN1 -> multi-head causal attention -> residual ----
    xn = _layernorm(x, ln1_s_ref[...], ln1_b_ref[...])

    # Fused QKV projection: one (T,E)x(E,3E) bf16 MXU matmul, f32 accumulation.
    qkv = jnp.dot(xn.astype(jnp.bfloat16), wqkv_ref[...],
                  preferred_element_type=jnp.float32)            # (T, 3E) f32

    # Head split via static lane slices + leading-axis stack (no minor-dim
    # reshape); heads become a leading batch dim, so the attention below is a
    # single pair of head-batched einsums instead of a per-head Python loop.
    def split_heads(col0):
        return jnp.stack(
            [qkv[:, col0 + h * hd: col0 + (h + 1) * hd] for h in range(num_heads)],
            axis=0).astype(jnp.bfloat16)                         # (NH, T, hd)

    q = split_heads(0)
    k = split_heads(E)
    v = split_heads(2 * E)

    # Causal mask from (T, T) iotas only; broadcast over heads inside where().
    row = lax.broadcasted_iota(jnp.int32, (T, T), 0)
    col = lax.broadcasted_iota(jnp.int32, (T, T), 1)
    causal = (col > row)[None, :, :]                             # (1, T, T) bool

    s = jnp.einsum('hqd,hkd->hqk', q, k,
                   preferred_element_type=jnp.float32) * scale   # (NH, T, T) f32
    s = jnp.where(causal, -1e30, s)        # finite mask value: no -inf arithmetic
    s = s - jnp.max(s, axis=-1, keepdims=True)
    p = jnp.exp(s)
    # approx reciprocal (EUP slot): rows sum to ~1 -- fine for inference,
    # revisit if this kernel is reused for training.
    p = p * pl.reciprocal(jnp.sum(p, axis=-1, keepdims=True), approx=True)

    ctx = jnp.einsum('hqk,hkd->hqd', p.astype(jnp.bfloat16), v,
                     preferred_element_type=jnp.float32)         # (NH, T, hd) f32

    # Output projection with the head merge folded into the matmul:
    #   concat_h(ctx_h) @ Wo == sum_h ctx_h @ Wo[h*hd:(h+1)*hd, :]
    # -> batched matmul against Wo reshaped to (NH, hd, E) + cheap leading-dim
    #    sum; no lane-space head merge, no scratch, no masked stores.
    attn = jnp.einsum('hqd,hde->hqe', ctx.astype(jnp.bfloat16), wo_h_ref[...],
                      preferred_element_type=jnp.float32)        # (NH, T, E) f32
    attn = jnp.sum(attn, axis=0) + bo_ref[...]                   # (T, E) f32

    x1 = x + attn                          # residual (dropout = identity, eval)

    # ---- Sub-block 2: LN2 -> FeedForward (GELU) -> residual ----
    xn2 = _layernorm(x1, ln2_s_ref[...], ln2_b_ref[...])
    h1 = jnp.dot(xn2.astype(jnp.bfloat16), w1_ref[...],
                 preferred_element_type=jnp.float32)             # (T, 4E) f32
    # Largest elementwise temporary: bf16 on v6e/v7x (bf16 VPU/EUP), f32 on v5e.
    h1 = h1.astype(ffn_act_dtype) + b1_ref[...].astype(ffn_act_dtype)
    h1 = _gelu(h1)
    ff = jnp.dot(h1.astype(jnp.bfloat16), w2_ref[...],
                 preferred_element_type=jnp.float32) + b2_ref[...]
    out_ref[...] = (x1 + ff).astype(out_ref.dtype)


def _ffn_act_dtype():
    """bf16 elementwise path exists on v6e/v7x; keep f32 on v5e and older."""
    try:
        kind = jax.devices()[0].device_kind.lower()
    except Exception:
        return jnp.float32
    return jnp.bfloat16 if ("v6" in kind or "v7" in kind or "7x" in kind) else jnp.float32


def _vmem_limit_bytes(B, T, E, H, num_heads):
    bf16, f32 = 2, 4
    weights = (3 * E * E + E * E + E * H + H * E) * bf16 + (E + H + E + 4 * E) * f32
    acts = 2 * (T * E) * f32 * 2                      # x + out blocks, double-buffered
    temps = (T * 3 * E + num_heads * T * T * 2 + T * H + 2 * T * E) * f32 \
            + (num_heads * (T * T + 3 * T * (E // num_heads)) + T * H) * bf16
    total = weights + acts + temps
    # Explicit limit (v5e's scoped default is only 16 MiB); clamp under v7x's
    # 64 MiB physical VMEM.
    return int(min(48 * 2 ** 20, max(2 * total + (1 << 20), 16 * 2 ** 20)))


def prepare_block_params(params, num_heads):
    """One-time prep (outside the per-call path): fuse QKV, split Wo per head,
    cast MXU operands to bf16 so the casts/fusions are not re-run each call."""
    E = params["wq"].shape[0]
    assert E % num_heads == 0, "emb_dim must be divisible by n_heads"
    hd = E // num_heads
    bf16, f32 = jnp.bfloat16, jnp.float32
    return {
        "wqkv": jnp.concatenate(
            [params["wq"], params["wk"], params["wv"]], axis=1).astype(bf16),
        "wo_h": params["wo"].astype(bf16).reshape(num_heads, hd, E),
        "bo": params["bo"].astype(f32),
        "w1": params["w1"].astype(bf16), "b1": params["b1"].astype(f32),
        "w2": params["w2"].astype(bf16), "b2": params["b2"].astype(f32),
        "ln1_s": params["ln1_s"].astype(f32), "ln1_b": params["ln1_b"].astype(f32),
        "ln2_s": params["ln2_s"].astype(f32), "ln2_b": params["ln2_b"].astype(f32),
    }


def transformer_block(x, prepared, num_heads):
    B, T, E = x.shape
    H = prepared["w1"].shape[1]
    assert E % num_heads == 0, "emb_dim must be divisible by n_heads"

    def inv(shape):
        nd = len(shape)
        return pl.BlockSpec(shape, lambda b, _n=nd: (0,) * _n)   # grid-invariant

    kernel = partial(transformer_block_kernel, num_heads=num_heads,
                     ffn_act_dtype=_ffn_act_dtype())

    return pl.pallas_call(
        kernel,
        out_shape=jax.ShapeDtypeStruct((B, T, E), x.dtype),
        grid=(B,),                                   # parallel batch axis: feeds both
        in_specs=[                                   # v7x TCs, restores DMA overlap
            pl.BlockSpec((None, T, E), lambda b: (b, 0, 0)),     # x (per-batch block)
            inv(prepared["wqkv"].shape),
            inv(prepared["wo_h"].shape),
            inv(prepared["bo"].shape),
            inv(prepared["w1"].shape), inv(prepared["b1"].shape),
            inv(prepared["w2"].shape), inv(prepared["b2"].shape),
            inv(prepared["ln1_s"].shape), inv(prepared["ln1_b"].shape),
            inv(prepared["ln2_s"].shape), inv(prepared["ln2_b"].shape),
        ],
        out_specs=pl.BlockSpec((None, T, E), lambda b: (b, 0, 0)),
        compiler_params=pltpu.CompilerParams(
            dimension_semantics=("parallel",),
            vmem_limit_bytes=_vmem_limit_bytes(B, T, E, H, num_heads)),
    )(
        x,
        prepared["wqkv"], prepared["wo_h"], prepared["bo"],
        prepared["w1"], prepared["b1"], prepared["w2"], prepared["b2"],
        prepared["ln1_s"], prepared["ln1_b"], prepared["ln2_s"], prepared["ln2_b"],
    )


def transformer_block_reference(x, params, num_heads):
    """Pure-JAX f32 reference mirroring the PyTorch module (for in-script check)."""
    B, T, E = x.shape
    hd = E // num_heads

    def ln(v, s, b):
        m = jnp.mean(v, axis=-1, keepdims=True)
        var = jnp.mean((v - m) ** 2, axis=-1, keepdims=True)
        return s * (v - m) / jnp.sqrt(var + 1e-5) + b

    shortcut = x
    xn = ln(x, params["ln1_s"], params["ln1_b"])
    q = xn @ params["wq"]
    k = xn @ params["wk"]
    v = xn @ params["wv"]
    q = q.reshape(B, T, num_heads, hd).transpose(0, 2, 1, 3)
    k = k.reshape(B, T, num_heads, hd).transpose(0, 2, 1, 3)
    v = v.reshape(B, T, num_heads, hd).transpose(0, 2, 1, 3)
    s = q @ jnp.swapaxes(k, -1, -2)
    mask = jnp.triu(jnp.ones((T, T), bool), k=1)
    s = jnp.where(mask, -jnp.inf, s)
    w = jax.nn.softmax(s / math.sqrt(hd), axis=-1)
    ctx = (w @ v).transpose(0, 2, 1, 3).reshape(B, T, E)
    x1 = ctx @ params["wo"] + params["bo"] + shortcut
    xn2 = ln(x1, params["ln2_s"], params["ln2_b"])
    h1 = xn2 @ params["w1"] + params["b1"]
    h1 = 0.5 * h1 * (1.0 + jnp.tanh(_GELU_C * (h1 + 0.044715 * h1 ** 3)))
    ff = h1 @ params["w2"] + params["b2"]
    return ff + x1


def init_params(key, emb_dim):
    E, H = emb_dim, 4 * emb_dim
    ks = jax.random.split(key, 8)
    std = 0.02
    return {
        "wq": std * jax.random.normal(ks[0], (E, E), jnp.float32),
        "wk": std * jax.random.normal(ks[1], (E, E), jnp.float32),
        "wv": std * jax.random.normal(ks[2], (E, E), jnp.float32),
        "wo": std * jax.random.normal(ks[3], (E, E), jnp.float32),
        "bo": jnp.zeros((1, E), jnp.float32),
        "w1": std * jax.random.normal(ks[4], (E, H), jnp.float32),
        "b1": jnp.zeros((1, H), jnp.float32),
        "w2": std * jax.random.normal(ks[5], (H, E), jnp.float32),
        "b2": jnp.zeros((1, E), jnp.float32),
        "ln1_s": jnp.ones((1, E), jnp.float32),
        "ln1_b": jnp.zeros((1, E), jnp.float32),
        "ln2_s": jnp.ones((1, E), jnp.float32),
        "ln2_b": jnp.zeros((1, E), jnp.float32),
    }


if __name__ == "__main__":
    # cfg: emb_dim=32, context_length=8, n_heads=4, drop_rate=0.0 (eval), qkv_bias=False
    B, T, E, NH = 2, 8, 32, 4
    key = jax.random.PRNGKey(0)
    kx, kp = jax.random.split(key)
    x = jax.random.normal(kx, (B, T, E), jnp.float32)
    params = init_params(kp, E)
    prepared = prepare_block_params(params, NH)      # one-time bf16 prep (cached)

    out = jax.block_until_ready(transformer_block(x, prepared, num_heads=NH))
    ref = transformer_block_reference(x, params, num_heads=NH)

    assert out.shape == (B, T, E)
    assert bool(jnp.all(jnp.isfinite(out)))
    # bf16 MXU operands (+ bf16 GELU on v6e/v7x) + approx reciprocal -> ~1e-2 slack.
    err = float(jnp.max(jnp.abs(out - ref)))
    assert bool(jnp.allclose(out, ref, atol=2e-2, rtol=2e-2)), err
    print("KERNEL_OK")
</pallas_src>

<mosaic_0001>
module attributes {stable_mosaic.version = 11 : i64} {
  func.func @transformer_block_kernel(%arg0: i32, %arg1: memref<1x8x32xf32, #tpu.memory_space<vmem>>, %arg2: memref<32x96xbf16, #tpu.memory_space<vmem>>, %arg3: memref<4x8x32xbf16, #tpu.memory_space<vmem>>, %arg4: memref<1x32xf32, #tpu.memory_space<vmem>>, %arg5: memref<32x128xbf16, #tpu.memory_space<vmem>>, %arg6: memref<1x128xf32, #tpu.memory_space<vmem>>, %arg7: memref<128x32xbf16, #tpu.memory_space<vmem>>, %arg8: memref<1x32xf32, #tpu.memory_space<vmem>>, %arg9: memref<1x32xf32, #tpu.memory_space<vmem>>, %arg10: memref<1x32xf32, #tpu.memory_space<vmem>>, %arg11: memref<1x32xf32, #tpu.memory_space<vmem>>, %arg12: memref<1x32xf32, #tpu.memory_space<vmem>>, %arg13: memref<1x8x32xf32, #tpu.memory_space<vmem>>) attributes {dimension_semantics = [#tpu.dimension_semantics<parallel>], iteration_bounds = array<i64: 2>, scalar_prefetch = 0 : i64, scratch_operands = 0 : i64, tpu.core_type = #tpu.core_type<tc>, window_params = [{transform_indices = @transform_0, window_bounds = array<i64: 1, 8, 32>}, {pipeline_mode = #tpu.pipeline_mode<synchronous>, transform_indices = @transform_1, window_bounds = array<i64: 32, 96>}, {pipeline_mode = #tpu.pipeline_mode<synchronous>, transform_indices = @transform_2, window_bounds = array<i64: 4, 8, 32>}, {pipeline_mode = #tpu.pipeline_mode<synchronous>, transform_indices = @transform_3, window_bounds = array<i64: 1, 32>}, {pipeline_mode = #tpu.pipeline_mode<synchronous>, transform_indices = @transform_4, window_bounds = array<i64: 32, 128>}, {pipeline_mode = #tpu.pipeline_mode<synchronous>, transform_indices = @transform_5, window_bounds = array<i64: 1, 128>}, {pipeline_mode = #tpu.pipeline_mode<synchronous>, transform_indices = @transform_6, window_bounds = array<i64: 128, 32>}, {pipeline_mode = #tpu.pipeline_mode<synchronous>, transform_indices = @transform_7, window_bounds = array<i64: 1, 32>}, {pipeline_mode = #tpu.pipeline_mode<synchronous>, transform_indices = @transform_8, window_bounds = array<i64: 1, 32>}, {pipeline_mode = #tpu.pipeline_mode<synchronous>, transform_indices = @transform_9, window_bounds = array<i64: 1, 32>}, {pipeline_mode = #tpu.pipeline_mode<synchronous>, transform_indices = @transform_10, window_bounds = array<i64: 1, 32>}, {pipeline_mode = #tpu.pipeline_mode<synchronous>, transform_indices = @transform_11, window_bounds = array<i64: 1, 32>}, {transform_indices = @transform_12, window_bounds = array<i64: 1, 8, 32>}]} {
    %c0 = arith.constant 0 : index
    %c0_0 = arith.constant 0 : index
    %c0_1 = arith.constant 0 : index
    %0 = vector.load %arg1[%c0, %c0_0, %c0_1] : memref<1x8x32xf32, #tpu.memory_space<vmem>>, vector<1x8x32xf32>
    %1 = vector.shape_cast %0 : vector<1x8x32xf32> to vector<8x32xf32>
    %c0_2 = arith.constant 0 : index
    %c0_3 = arith.constant 0 : index
    %2 = vector.load %arg9[%c0_2, %c0_3] : memref<1x32xf32, #tpu.memory_space<vmem>>, vector<1x32xf32>
    %c0_4 = arith.constant 0 : index
    %c0_5 = arith.constant 0 : index
    %3 = vector.load %arg10[%c0_4, %c0_5] : memref<1x32xf32, #tpu.memory_space<vmem>>, vector<1x32xf32>
    %cst = arith.constant dense<0.000000e+00> : vector<8xf32>
    %4 = vector.multi_reduction <add>, %1, %cst [1] : vector<8x32xf32> to vector<8xf32>
    %5 = vector.shape_cast %4 : vector<8xf32> to vector<8x1xf32>
    %cst_6 = arith.constant 3.200000e+01 : f32
    %6 = vector.broadcast %cst_6 : f32 to vector<8x1xf32>
    %7 = arith.divf %5, %6 : vector<8x1xf32>
    %8 = vector.broadcast %7 : vector<8x1xf32> to vector<8x32xf32>
    %9 = arith.subf %1, %8 : vector<8x32xf32>
    %10 = arith.mulf %9, %9 : vector<8x32xf32>
    %cst_7 = arith.constant dense<0.000000e+00> : vector<8xf32>
    %11 = vector.multi_reduction <add>, %10, %cst_7 [1] : vector<8x32xf32> to vector<8xf32>
    %12 = vector.shape_cast %11 : vector<8xf32> to vector<8x1xf32>
    %cst_8 = arith.constant 3.200000e+01 : f32
    %13 = vector.broadcast %cst_8 : f32 to vector<8x1xf32>
    %14 = arith.divf %12, %13 : vector<8x1xf32>
    %cst_9 = arith.constant 9.99999974E-6 : f32
    %15 = vector.broadcast %cst_9 : f32 to vector<8x1xf32>
    %16 = arith.addf %14, %15 : vector<8x1xf32>
    %17 = math.rsqrt %16 : vector<8x1xf32>
    %18 = vector.broadcast %17 : vector<8x1xf32> to vector<8x32xf32>
    %19 = arith.mulf %9, %18 : vector<8x32xf32>
    %20 = vector.broadcast %2 : vector<1x32xf32> to vector<8x32xf32>
    %21 = arith.mulf %19, %20 : vector<8x32xf32>
    %22 = vector.broadcast %3 : vector<1x32xf32> to vector<8x32xf32>
    %23 = arith.addf %21, %22 : vector<8x32xf32>
    %24 = arith.truncf %23 : vector<8x32xf32> to vector<8x32xbf16>
    %c0_10 = arith.constant 0 : index
    %c0_11 = arith.constant 0 : index
    %25 = vector.load %arg2[%c0_10, %c0_11] : memref<32x96xbf16, #tpu.memory_space<vmem>>, vector<32x96xbf16>
    %cst_12 = arith.constant dense<0.000000e+00> : vector<8x96xf32>
    %26 = tpu.matmul %24, %25, %cst_12 {dimension_numbers = #tpu.dot_dimension_numbers<[1], [0], [0], [1], [0, 0, 1, 1], [], []>} : vector<8x32xbf16>, vector<32x96xbf16>, vector<8x96xf32> -> vector<8x96xf32>
    %27 = vector.extract_strided_slice %26 {offsets = [0, 0], sizes = [8, 8], strides = [1, 1]} : vector<8x96xf32> to vector<8x8xf32>
    %28 = vector.extract_strided_slice %26 {offsets = [0, 8], sizes = [8, 8], strides = [1, 1]} : vector<8x96xf32> to vector<8x8xf32>
    %29 = vector.extract_strided_slice %26 {offsets = [0, 16], sizes = [8, 8], strides = [1, 1]} : vector<8x96xf32> to vector<8x8xf32>
    %30 = vector.extract_strided_slice %26 {offsets = [0, 24], sizes = [8, 8], strides = [1, 1]} : vector<8x96xf32> to vector<8x8xf32>
    %31 = vector.shape_cast %27 : vector<8x8xf32> to vector<1x8x8xf32>
    %32 = vector.shape_cast %28 : vector<8x8xf32> to vector<1x8x8xf32>
    %33 = vector.shape_cast %29 : vector<8x8xf32> to vector<1x8x8xf32>
    %34 = vector.shape_cast %30 : vector<8x8xf32> to vector<1x8x8xf32>
    %35 = tpu.concatenate %31, %32, %33, %34 in 0 : vector<1x8x8xf32>, vector<1x8x8xf32>, vector<1x8x8xf32>, vector<1x8x8xf32> -> vector<4x8x8xf32>
    %36 = arith.truncf %35 : vector<4x8x8xf32> to vector<4x8x8xbf16>
    %37 = vector.extract_strided_slice %26 {offsets = [0, 32], sizes = [8, 8], strides = [1, 1]} : vector<8x96xf32> to vector<8x8xf32>
    %38 = vector.extract_strided_slice %26 {offsets = [0, 40], sizes = [8, 8], strides = [1, 1]} : vector<8x96xf32> to vector<8x8xf32>
    %39 = vector.extract_strided_slice %26 {offsets = [0, 48], sizes = [8, 8], strides = [1, 1]} : vector<8x96xf32> to vector<8x8xf32>
    %40 = vector.extract_strided_slice %26 {offsets = [0, 56], sizes = [8, 8], strides = [1, 1]} : vector<8x96xf32> to vector<8x8xf32>
    %41 = vector.shape_cast %37 : vector<8x8xf32> to vector<1x8x8xf32>
    %42 = vector.shape_cast %38 : vector<8x8xf32> to vector<1x8x8xf32>
    %43 = vector.shape_cast %39 : vector<8x8xf32> to vector<1x8x8xf32>
    %44 = vector.shape_cast %40 : vector<8x8xf32> to vector<1x8x8xf32>
    %45 = tpu.concatenate %41, %42, %43, %44 in 0 : vector<1x8x8xf32>, vector<1x8x8xf32>, vector<1x8x8xf32>, vector<1x8x8xf32> -> vector<4x8x8xf32>
    %46 = arith.truncf %45 : vector<4x8x8xf32> to vector<4x8x8xbf16>
    %47 = vector.extract_strided_slice %26 {offsets = [0, 64], sizes = [8, 8], strides = [1, 1]} : vector<8x96xf32> to vector<8x8xf32>
    %48 = vector.extract_strided_slice %26 {offsets = [0, 72], sizes = [8, 8], strides = [1, 1]} : vector<8x96xf32> to vector<8x8xf32>
    %49 = vector.extract_strided_slice %26 {offsets = [0, 80], sizes = [8, 8], strides = [1, 1]} : vector<8x96xf32> to vector<8x8xf32>
    %50 = vector.extract_strided_slice %26 {offsets = [0, 88], sizes = [8, 8], strides = [1, 1]} : vector<8x96xf32> to vector<8x8xf32>
    %51 = vector.shape_cast %47 : vector<8x8xf32> to vector<1x8x8xf32>
    %52 = vector.shape_cast %48 : vector<8x8xf32> to vector<1x8x8xf32>
    %53 = vector.shape_cast %49 : vector<8x8xf32> to vector<1x8x8xf32>
    %54 = vector.shape_cast %50 : vector<8x8xf32> to vector<1x8x8xf32>
    %55 = tpu.concatenate %51, %52, %53, %54 in 0 : vector<1x8x8xf32>, vector<1x8x8xf32>, vector<1x8x8xf32>, vector<1x8x8xf32> -> vector<4x8x8xf32>
    %56 = arith.truncf %55 : vector<4x8x8xf32> to vector<4x8x8xbf16>
    %57 = tpu.iota {dimensions = array<i32: 0>} : vector<8x8xi32>
    %58 = tpu.iota {dimensions = array<i32: 1>} : vector<8x8xi32>
    %59 = arith.cmpi sgt, %58, %57 : vector<8x8xi32>
    %60 = vector.shape_cast %59 : vector<8x8xi1> to vector<1x8x8xi1>
    "tpu.trace_start"() <{level = 10 : i32, message = "hqd,hkd->hqk"}> : () -> ()
    %cst_13 = arith.constant dense<0.000000e+00> : vector<4x8x8xf32>
    %61 = tpu.matmul %36, %46, %cst_13 {dimension_numbers = #tpu.dot_dimension_numbers<[2], [2], [1], [1], [0, 0, 0, 1, 1, 1], [0], [0]>} : vector<4x8x8xbf16>, vector<4x8x8xbf16>, vector<4x8x8xf32> -> vector<4x8x8xf32>
    "tpu.trace_stop"() : () -> ()
    %cst_14 = arith.constant 0.353553385 : f32
    %62 = vector.broadcast %cst_14 : f32 to vector<4x8x8xf32>
    %63 = arith.mulf %61, %62 : vector<4x8x8xf32>
    %cst_15 = arith.constant -1.000000e+30 : f32
    %64 = vector.shape_cast %60 : vector<1x8x8xi1> to vector<1x8x8xi1>
    %65 = vector.broadcast %64 : vector<1x8x8xi1> to vector<4x8x8xi1>
    %66 = vector.broadcast %cst_15 : f32 to vector<4x8x8xf32>
    %67 = arith.select %65, %66, %63 : vector<4x8x8xi1>, vector<4x8x8xf32>
    %cst_16 = arith.constant dense<0xFF800000> : vector<4x8xf32>
    %68 = vector.multi_reduction <maximumf>, %67, %cst_16 [2] : vector<4x8x8xf32> to vector<4x8xf32>
    %69 = vector.shape_cast %68 : vector<4x8xf32> to vector<4x8x1xf32>
    %70 = vector.broadcast %69 : vector<4x8x1xf32> to vector<4x8x8xf32>
    %71 = arith.subf %67, %70 : vector<4x8x8xf32>
    %72 = math.exp %71 : vector<4x8x8xf32>
    %cst_17 = arith.constant dense<0.000000e+00> : vector<4x8xf32>
    %73 = vector.multi_reduction <add>, %72, %cst_17 [2] : vector<4x8x8xf32> to vector<4x8xf32>
    %74 = vector.shape_cast %73 : vector<4x8xf32> to vector<4x8x1xf32>
    %75 = tpu.reciprocal %74 {approx = true} : vector<4x8x1xf32> -> vector<4x8x1xf32>
    %76 = vector.broadcast %75 : vector<4x8x1xf32> to vector<4x8x8xf32>
    %77 = arith.mulf %72, %76 : vector<4x8x8xf32>
    %78 = arith.truncf %77 : vector<4x8x8xf32> to vector<4x8x8xbf16>
    "tpu.trace_start"() <{level = 10 : i32, message = "hqk,hkd->hqd"}> : () -> ()
    %cst_18 = arith.constant dense<0.000000e+00> : vector<4x8x8xf32>
    %79 = tpu.matmul %78, %56, %cst_18 {dimension_numbers = #tpu.dot_dimension_numbers<[2], [1], [1], [2], [0, 0, 0, 1, 1, 2], [0], [0]>} : vector<4x8x8xbf16>, vector<4x8x8xbf16>, vector<4x8x8xf32> -> vector<4x8x8xf32>
    "tpu.trace_stop"() : () -> ()
    %80 = arith.truncf %79 : vector<4x8x8xf32> to vector<4x8x8xbf16>
    %c0_19 = arith.constant 0 : index
    %c0_20 = arith.constant 0 : index
    %c0_21 = arith.constant 0 : index
    %81 = vector.load %arg3[%c0_19, %c0_20, %c0_21] : memref<4x8x32xbf16, #tpu.memory_space<vmem>>, vector<4x8x32xbf16>
    "tpu.trace_start"() <{level = 10 : i32, message = "hqd,hde->hqe"}> : () -> ()
    %cst_22 = arith.constant dense<0.000000e+00> : vector<4x8x32xf32>
    %82 = tpu.matmul %80, %81, %cst_22 {dimension_numbers = #tpu.dot_dimension_numbers<[2], [1], [1], [2], [0, 0, 0, 1, 1, 2], [0], [0]>} : vector<4x8x8xbf16>, vector<4x8x32xbf16>, vector<4x8x32xf32> -> vector<4x8x32xf32>
    "tpu.trace_stop"() : () -> ()
    %cst_23 = arith.constant dense<0.000000e+00> : vector<8x32xf32>
    %83 = vector.multi_reduction <add>, %82, %cst_23 [0] : vector<4x8x32xf32> to vector<8x32xf32>
    %c0_24 = arith.constant 0 : index
    %c0_25 = arith.constant 0 : index
    %84 = vector.load %arg4[%c0_24, %c0_25] : memref<1x32xf32, #tpu.memory_space<vmem>>, vector<1x32xf32>
    %85 = vector.broadcast %84 : vector<1x32xf32> to vector<8x32xf32>
    %86 = arith.addf %83, %85 : vector<8x32xf32>
    %87 = arith.addf %1, %86 : vector<8x32xf32>
    %c0_26 = arith.constant 0 : index
    %c0_27 = arith.constant 0 : index
    %88 = vector.load %arg11[%c0_26, %c0_27] : memref<1x32xf32, #tpu.memory_space<vmem>>, vector<1x32xf32>
    %c0_28 = arith.constant 0 : index
    %c0_29 = arith.constant 0 : index
    %89 = vector.load %arg12[%c0_28, %c0_29] : memref<1x32xf32, #tpu.memory_space<vmem>>, vector<1x32xf32>
    %cst_30 = arith.constant dense<0.000000e+00> : vector<8xf32>
    %90 = vector.multi_reduction <add>, %87, %cst_30 [1] : vector<8x32xf32> to vector<8xf32>
    %91 = vector.shape_cast %90 : vector<8xf32> to vector<8x1xf32>
    %cst_31 = arith.constant 3.200000e+01 : f32
    %92 = vector.broadcast %cst_31 : f32 to vector<8x1xf32>
    %93 = arith.divf %91, %92 : vector<8x1xf32>
    %94 = vector.broadcast %93 : vector<8x1xf32> to vector<8x32xf32>
    %95 = arith.subf %87, %94 : vector<8x32xf32>
    %96 = arith.mulf %95, %95 : vector<8x32xf32>
    %cst_32 = arith.constant dense<0.000000e+00> : vector<8xf32>
    %97 = vector.multi_reduction <add>, %96, %cst_32 [1] : vector<8x32xf32> to vector<8xf32>
    %98 = vector.shape_cast %97 : vector<8xf32> to vector<8x1xf32>
    %cst_33 = arith.constant 3.200000e+01 : f32
    %99 = vector.broadcast %cst_33 : f32 to vector<8x1xf32>
    %100 = arith.divf %98, %99 : vector<8x1xf32>
    %cst_34 = arith.constant 9.99999974E-6 : f32
    %101 = vector.broadcast %cst_34 : f32 to vector<8x1xf32>
    %102 = arith.addf %100, %101 : vector<8x1xf32>
    %103 = math.rsqrt %102 : vector<8x1xf32>
    %104 = vector.broadcast %103 : vector<8x1xf32> to vector<8x32xf32>
    %105 = arith.mulf %95, %104 : vector<8x32xf32>
    %106 = vector.broadcast %88 : vector<1x32xf32> to vector<8x32xf32>
    %107 = arith.mulf %105, %106 : vector<8x32xf32>
    %108 = vector.broadcast %89 : vector<1x32xf32> to vector<8x32xf32>
    %109 = arith.addf %107, %108 : vector<8x32xf32>
    %110 = arith.truncf %109 : vector<8x32xf32> to vector<8x32xbf16>
    %c0_35 = arith.constant 0 : index
    %c0_36 = arith.constant 0 : index
    %111 = vector.load %arg5[%c0_35, %c0_36] : memref<32x128xbf16, #tpu.memory_space<vmem>>, vector<32x128xbf16>
    %cst_37 = arith.constant dense<0.000000e+00> : vector<8x128xf32>
    %112 = tpu.matmul %110, %111, %cst_37 {dimension_numbers = #tpu.dot_dimension_numbers<[1], [0], [0], [1], [0, 0, 1, 1], [], []>} : vector<8x32xbf16>, vector<32x128xbf16>, vector<8x128xf32> -> vector<8x128xf32>
    %c0_38 = arith.constant 0 : index
    %c0_39 = arith.constant 0 : index
    %113 = vector.load %arg6[%c0_38, %c0_39] : memref<1x128xf32, #tpu.memory_space<vmem>>, vector<1x128xf32>
    %114 = vector.broadcast %113 : vector<1x128xf32> to vector<8x128xf32>
    %115 = arith.addf %112, %114 : vector<8x128xf32>
    %cst_40 = arith.constant 5.000000e-01 : f32
    %116 = vector.broadcast %cst_40 : f32 to vector<8x128xf32>
    %117 = arith.mulf %116, %115 : vector<8x128xf32>
    %cst_41 = arith.constant 4.471500e-02 : f32
    %118 = vector.broadcast %cst_41 : f32 to vector<8x128xf32>
    %119 = arith.mulf %118, %115 : vector<8x128xf32>
    %120 = arith.mulf %119, %115 : vector<8x128xf32>
    %121 = arith.mulf %120, %115 : vector<8x128xf32>
    %122 = arith.addf %115, %121 : vector<8x128xf32>
    %cst_42 = arith.constant 0.797884583 : f32
    %123 = vector.broadcast %cst_42 : f32 to vector<8x128xf32>
    %124 = arith.mulf %123, %122 : vector<8x128xf32>
    %125 = math.tanh %124 : vector<8x128xf32>
    %cst_43 = arith.constant 1.000000e+00 : f32
    %126 = vector.broadcast %cst_43 : f32 to vector<8x128xf32>
    %127 = arith.addf %126, %125 : vector<8x128xf32>
    %128 = arith.mulf %117, %127 : vector<8x128xf32>
    %129 = arith.truncf %128 : vector<8x128xf32> to vector<8x128xbf16>
    %c0_44 = arith.constant 0 : index
    %c0_45 = arith.constant 0 : index
    %130 = vector.load %arg7[%c0_44, %c0_45] : memref<128x32xbf16, #tpu.memory_space<vmem>>, vector<128x32xbf16>
    %cst_46 = arith.constant dense<0.000000e+00> : vector<8x32xf32>
    %131 = tpu.matmul %129, %130, %cst_46 {dimension_numbers = #tpu.dot_dimension_numbers<[1], [0], [0], [1], [0, 0, 1, 1], [], []>} : vector<8x128xbf16>, vector<128x32xbf16>, vector<8x32xf32> -> vector<8x32xf32>
    %c0_47 = arith.constant 0 : index
    %c0_48 = arith.constant 0 : index
    %132 = vector.load %arg8[%c0_47, %c0_48] : memref<1x32xf32, #tpu.memory_space<vmem>>, vector<1x32xf32>
    %133 = vector.broadcast %132 : vector<1x32xf32> to vector<8x32xf32>
    %134 = arith.addf %131, %133 : vector<8x32xf32>
    %135 = arith.addf %87, %134 : vector<8x32xf32>
    %c0_49 = arith.constant 0 : index
    %c0_50 = arith.constant 0 : index
    %c0_51 = arith.constant 0 : index
    %136 = vector.load %arg13[%c0_49, %c0_50, %c0_51] : memref<1x8x32xf32, #tpu.memory_space<vmem>>, vector<1x8x32xf32>
    %137 = vector.shape_cast %136 : vector<1x8x32xf32> to vector<8x32xf32>
    %138 = vector.shape_cast %135 : vector<8x32xf32> to vector<1x8x32xf32>
    tpu.vector_store %arg13[%c0_49, %c0_50, %c0_51], %138 {strides = array<i32>} : memref<1x8x32xf32, #tpu.memory_space<vmem>>, vector<1x8x32xf32>,
    return
  }
  func.func @transform_0(%arg0: i32) -> (i32, i32, i32) {
    %c0_i32 = arith.constant 0 : i32
    %c0_i32_0 = arith.constant 0 : i32
    %c0_i32_1 = arith.constant 0 : i32
    return %arg0, %c0_i32, %c0_i32_0 : i32, i32, i32
  }
  func.func @transform_1(%arg0: i32) -> (i32, i32) {
    %c0_i32 = arith.constant 0 : i32
    %c0_i32_0 = arith.constant 0 : i32
    %c0_i32_1 = arith.constant 0 : i32
    return %c0_i32, %c0_i32_0 : i32, i32
  }
  func.func @transform_2(%arg0: i32) -> (i32, i32, i32) {
    %c0_i32 = arith.constant 0 : i32
    %c0_i32_0 = arith.constant 0 : i32
    %c0_i32_1 = arith.constant 0 : i32
    %c0_i32_2 = arith.constant 0 : i32
    return %c0_i32, %c0_i32_0, %c0_i32_1 : i32, i32, i32
  }
  func.func @transform_3(%arg0: i32) -> (i32, i32) {
    %c0_i32 = arith.constant 0 : i32
    %c0_i32_0 = arith.constant 0 : i32
    %c0_i32_1 = arith.constant 0 : i32
    return %c0_i32, %c0_i32_0 : i32, i32
  }
  func.func @transform_4(%arg0: i32) -> (i32, i32) {
    %c0_i32 = arith.constant 0 : i32
    %c0_i32_0 = arith.constant 0 : i32
    %c0_i32_1 = arith.constant 0 : i32
    return %c0_i32, %c0_i32_0 : i32, i32
  }
  func.func @transform_5(%arg0: i32) -> (i32, i32) {
    %c0_i32 = arith.constant 0 : i32
    %c0_i32_0 = arith.constant 0 : i32
    %c0_i32_1 = arith.constant 0 : i32
    return %c0_i32, %c0_i32_0 : i32, i32
  }
  func.func @transform_6(%arg0: i32) -> (i32, i32) {
    %c0_i32 = arith.constant 0 : i32
    %c0_i32_0 = arith.constant 0 : i32
    %c0_i32_1 = arith.constant 0 : i32
    return %c0_i32, %c0_i32_0 : i32, i32
  }
  func.func @transform_7(%arg0: i32) -> (i32, i32) {
    %c0_i32 = arith.constant 0 : i32
    %c0_i32_0 = arith.constant 0 : i32
    %c0_i32_1 = arith.constant 0 : i32
    return %c0_i32, %c0_i32_0 : i32, i32
  }
  func.func @transform_8(%arg0: i32) -> (i32, i32) {
    %c0_i32 = arith.constant 0 : i32
    %c0_i32_0 = arith.constant 0 : i32
    %c0_i32_1 = arith.constant 0 : i32
    return %c0_i32, %c0_i32_0 : i32, i32
  }
  func.func @transform_9(%arg0: i32) -> (i32, i32) {
    %c0_i32 = arith.constant 0 : i32
    %c0_i32_0 = arith.constant 0 : i32
    %c0_i32_1 = arith.constant 0 : i32
    return %c0_i32, %c0_i32_0 : i32, i32
  }
  func.func @transform_10(%arg0: i32) -> (i32, i32) {
    %c0_i32 = arith.constant 0 : i32
    %c0_i32_0 = arith.constant 0 : i32
    %c0_i32_1 = arith.constant 0 : i32
    return %c0_i32, %c0_i32_0 : i32, i32
  }
  func.func @transform_11(%arg0: i32) -> (i32, i32) {
    %c0_i32 = arith.constant 0 : i32
    %c0_i32_0 = arith.constant 0 : i32
    %c0_i32_1 = arith.constant 0 : i32
    return %c0_i32, %c0_i32_0 : i32, i32
  }
  func.func @transform_12(%arg0: i32) -> (i32, i32, i32) {
    %c0_i32 = arith.constant 0 : i32
    %c0_i32_0 = arith.constant 0 : i32
    %c0_i32_1 = arith.constant 0 : i32
    return %arg0, %c0_i32, %c0_i32_0 : i32, i32, i32
  }
}

</mosaic_0001>

<bundles_post_ra>
// kernel: tpu_custom_call.1
= control target key start
LH: loop header
LB: loop body
LE: loop exit
PB: predicated region body
PF: predicated region fallthrough
CT: control target
= control target key end

     0   :  { %s1601_s0 = inlined_call_operand.vmem [shape: f32[2,8,32], index: 0, kind: input, shape index: {}]   ;;  %s1602_s1 = inlined_call_operand.vmem [shape: bf16[32,96], index: 1, kind: input, shape index: {}]   ;;  %s1603_s2 = inlined_call_operand.vmem [shape: bf16[4,8,32], index: 2, kind: input, shape index: {}]   ;;  %s1604_s3 = inlined_call_operand.vmem [shape: f32[1,32], index: 3, kind: input, shape index: {}]   ;;  %s1605_s4 = inlined_call_operand.vmem [shape: bf16[32,128], index: 4, kind: input, shape index: {}]   ;;  %s1606_s5 = inlined_call_operand.vmem [shape: f32[1,128], index: 5, kind: input, shape index: {}]   ;;  %s1607_s6 = inlined_call_operand.vmem [shape: bf16[128,32], index: 6, kind: input, shape index: {}]   ;;  %s1608_s7 = inlined_call_operand.vmem [shape: f32[1,32], index: 7, kind: input, shape index: {}]   ;;  %s1609_s8 = inlined_call_operand.vmem [shape: f32[1,32], index: 8, kind: input, shape index: {}]   ;;  %s1610_s9 = inlined_call_operand.vmem [shape: f32[1,32], index: 9, kind: input, shape index: {}]   ;;  %s1611_s10 = inlined_call_operand.vmem [shape: f32[1,32], index: 10, kind: input, shape index: {}]   ;;  %s1612_s11 = inlined_call_operand.vmem [shape: f32[1,32], index: 11, kind: input, shape index: {}]   ;;  %s1613_s12 = inlined_call_operand.hbm [shape: f32[2,8,32], index: 12, kind: output, shape index: {}]  }
   0x1   :  { %1614 = sst [smem:[#allocation5_spill]] %s1601_s0 }
   0x2   :  { %1615 = sst [smem:[#allocation6_spill]] %s1602_s1 }
   0x3   :  { %1616 = sst [smem:[#allocation7_spill]] %s1603_s2 }
   0x4   :  { %17 = vsyncpa [#allocation3], 0 }
   0x5   :  { %19 = vsyncpa [#allocation3 + $0x1], 0  ;;  %s1372_s21 = smov 0   ;;  %s1374_s22 = smov 0  }
   0x6   :  { %s1376_s23 = smov 0   ;;  %s1378_s24 = smov 0  }
   0x7 LB: > { %s1393_s25 = sadd.s32 4294967295, %s1299_s24   ;;  %s1077_s26 = sadd.s32 4294967294, %s1299_s24   ;;  %s1299_s24 = sphi %s1378_s24, %s1625_s24   ;;  %s1295_s23 = sphi %s1376_s23, %s1624_s23   ;;  %s1291_s22 = sphi %s1374_s22, %s1623_s22   ;;  %s1287_s21 = sphi %s1372_s21, %s1622_s21  }
   0x8   : > { %s1397_s27 = sadd.s32 1, %s1299_s24   ;;  %s289_s28 = sadd.s32 1, %s1295_s23 }
   0x9   : > { %s286_s29 = ssub.s32 %s1299_s24, %s1397_s27  ;;  %p299_p0 = scmp.ne.s32.totalorder %s1295_s23, %s1291_s22 }
   0xa   : > { %p287_p1 = scmp.eq.s32.totalorder %s286_s29, 0  ;;  %p300_p2 = scmp.eq.s32.totalorder %s1393_s25, 1 }
   0xb   : > { %p305_p3 = scmp.ne.s32.totalorder %s1291_s22, %s1287_s21  ;;  %p306_p4 = scmp.eq.s32.totalorder %s1077_s26, 1 }
   0xc   : > { %s1408_s30 = scalar_select %p287_p1, %s1295_s23, %s289_s28  }
   0xd   : > { %p1410_p5 = por %p300_p2, %p299_p0  ;;  %p1414_p6 = por %p306_p4, %p305_p3 }
   0xe   : > { %p1080_p7 = scmp.ge.s32.totalorder %s1299_s24, 1  ;;  %p364_p8 = scmp.lt.s32.totalorder %s1299_s24, 3 }
  0x10   : > { %p365_p9 = pnand %p1080_p7, %p364_p8 }
  0x11   : > { %p405_p10 = scmp.lt.s32.totalorder (!%p365_p9), %s1393_s25, 1  ;;  %s1619_s0 = sld [smem:[#allocation5_spill]] (!%p365_p9) }
  0x12   : > { %368 = sbr.rel (%p365_p9) target bundleno = 1919 (0x77f), region = 68  ;;  %s1620_s1 = sld [smem:[#allocation6_spill]] (!%p365_p9) }
  0x13   : > { %s1303_s20 = smov (!%p365_p9), 120   ;;  %s1304_s26 = smov (!%p365_p9), 112  }
  0x14   : > { %s1305_s28 = smov (!%p365_p9), 96   ;;  %s1306_s29 = smov (!%p365_p9), 64  }
  0x15   : > { %s1621_s2 = sld [smem:[#allocation7_spill]] (!%p365_p9) }
  0x17   : > { %s406_s15 = scalar_select %p405_p10, %s1393_s25, 1  ;;  %vm413_vm0 = vcmask 261120   ;;  %v1301_v2 = vmov 32.0   ;;  %v1206_v25 = vld [vmem:[%s1609_s8] ss:$0 sm:$0xff]  ;;  %vm508_vm5 = vcmask 64512   ;;  %v498_v57 = vlaneseq }
  0x18   : > { %1213 = vrcp.f32 %v1301_v2  ;;  %v1150_v14 = vld [vmem:[%s1620_s1 + $0x8] sm:$0xff]  ;;  %v1149_v15 = vld [vmem:[%s1620_s1] sm:$0xff]  ;;  %vm663_vm7 = vcmask 1043456  }
  0x19   : > { %s1082_s16 = sshll.u32 %s406_s15, 3  ;;  %477 = vmatpush.bf16.msra.mxu0 %v1150_v14  ;;  %v1207_v28 = vld [vmem:[%s1610_s9] ss:$0 sm:$0xff]  ;;  %v499_v58 = vshrl.u32 %v498_v57, 7  ;;  %v501_v59 = vand.u32 127, %v498_v57  ;;  %s1146_s15 = sshll.u32 %s1393_s25, 3 }
  0x1a   : > { %s408_s19 = scalar_lea.vmem %s1619_s0, %s1082_s16  ;;  %s402_s0 = sand.u32 1, %s1291_s22  }
  0x1b   : > { %v1425_v0 = vld [vmem:[%s408_s19] sm:$0xff]  ;;  %s1302_s19 = smov 104   ;;  %vm502_vm6 = vcmp.gt.s32.totalorder %v501_v59, %v499_v58  ;;  %s1003_s25 = scalar_lea.sflag [#allocation3], %s402_s0 }
  0x1c   : > { %v414_v1 = vsel %vm413_vm0, %v1425_v0, 0.0 }
  0x1d   : > { %415 = vadd.xlane.f32.xlu0 %v414_v1  ;;  %478 = vmatpush.bf16.msra.mxu0 %v1149_v15 }
  0x1e   : > { %v1214_v3 = vpop.eup %1213 }
  0x1f   : > { %v418_v4 = vmul.f32 32.0, %v1214_v3  ;;  %vm422_vm1 = vweird.f32 %v1214_v3 }
  0x21   : > { %v419_v5 = vsub.f32 1.0, %v418_v4 }
  0x23   : > { %v420_v6 = vmul.f32 %v1214_v3, %v419_v5 }
  0x25   : > { %v421_v7 = vadd.f32 %v1214_v3, %v420_v6 }
  0x27   : > { %v1429_v8 = vsel %vm422_vm1, %v1214_v3, %v421_v7 }
  0x90   : > { %v416_v9 = vpop.xlane.xlu0 %415 }
  0x91   : > { %v424_v10 = vmul.f32 %v1429_v8, %v416_v9 }
  0x93   : > { %v425_v11 = vsub.f32 %v1425_v0, %v424_v10 }
  0x95   : > { %v426_v12 = vmul.f32 %v425_v11, %v425_v11 }
  0x97   : > { %v427_v13 = vsel %vm413_vm0, %v426_v12, 0.0 }
  0x98   : > { %428 = vadd.xlane.f32.xlu0 %v427_v13 }
 0x10b   : > { %v429_v16 = vpop.xlane.xlu0 %428 }
 0x10c   : > { %v430_v17 = vmul.f32 %v429_v16, %v1429_v8 }
 0x10e   : > { %v431_v18 = vadd.f32 1e-05, %v430_v17 }
 0x110   : > { %1215 = vrsqrt.f32 %v431_v18  ;;  %vm438_vm3 = vweird.f32 %v431_v18 }
 0x116   : > { %v1216_v19 = vpop.eup %1215 }
 0x117   : > { %v433_v20 = vmul.f32 %v1216_v19, %v431_v18  ;;  %vm439_vm2 = vweird.f32 %v1216_v19 }
 0x118   : > { %vm440_vm4 = vmor %vm438_vm3, %vm439_vm2 }
 0x119   : > { %v434_v21 = vmul.f32 %v1216_v19, %v433_v20 }
 0x11b   : > { %v435_v22 = vmul.f32 0.5, %v434_v21 }
 0x11d   : > { %v436_v23 = vsub.f32 1.5, %v435_v22 }
 0x11f   : > { %v437_v24 = vmul.f32 %v1216_v19, %v436_v23 }
 0x121   : > { %v441_v26 = vsel %vm440_vm4, %v1216_v19, %v437_v24 }
 0x122   : > { %v442_v27 = vmul.f32 %v441_v26, %v425_v11 }
 0x124   : > { %v446_v29 = vmul.f32 %v1206_v25, %v442_v27 }
 0x126   : > { %v450_v30 = vadd.f32 %v1207_v28, %v446_v29 }
 0x128   : > { %v451_v31 = vpack.c.bf16 %v450_v30, %v450_v30 }
 0x12a   : > { %1091 = vmatmul.msk.bf16.vlgmr.msra.gmra.mxu0 %vm413_vm0, %v451_v31 }
 0x1a7   : > { %v480_v32 = vpop.f32.mrf.mxu0 }
 0x1a8   : > { %491 = vrot.lane.b32.xlu2 %v480_v32, %s1302_s19  ;;  %485 = vrot.lane.b32.xlu1 %v480_v32, %s1303_s20  ;;  %v494_v33 = vpack.c.bf16 %v480_v32, %v480_v32  ;;  %s1013_s20 = scalar_lea.hbm %s1613_s12, %s1146_s15 }
 0x1a9   : > { %s1017_s1 = sshll.u32 %s1013_s20, 4  ;;  %s1018_s1 = int_to_ptr.hbm [resolvable:$true] %s1017_s1 }
 0x1aa   : > { %v504_v35 = vunpack.c.l.b16 %v494_v33 }
 0x1ac   : > { %v1448_v36 = vpack.c.b16 %v504_v35, %v504_v35 }
 0x1af   : > { %v482_v34 = vpop.f32.mrf.mxu0 }
 0x1b0   : > { %488 = vrot.lane.b32.xlu1 %v480_v32, %s1304_s26 }
 0x1b8   : > { %506 = vrot.lane.b32.xlu1 %v1448_v36, %s1305_s28 }
 0x202   : > { %v492_v39 = vpop.permute.xlu2 %491 }
 0x203   : > { %v497_v41 = vpack.c.bf16 %v492_v39, %v492_v39 }
 0x205   : > { %v577_v44 = vunpack.c.l.b16 %v497_v41 }
 0x207   : > { %v578_v47 = vpack.c.b16 %v577_v44, %v577_v44 }
 0x21a   : > { %v486_v37 = vpop.permute.xlu1 %485 }
 0x21b   : > { %v495_v38 = vpack.c.bf16 %v486_v37, %v486_v37 }
 0x21d   : > { %v529_v40 = vunpack.c.l.b16 %v495_v38 }
 0x21f   : > { %v1451_v42 = vpack.c.b16 %v529_v40, %v529_v40 }
 0x221   : > { %531 = vrot.lane.b32.xlu2 %v1451_v42, %s1305_s28 }
 0x222   : > { %v489_v43 = vpop.permute.xlu1 %488 }
 0x223   : > { %v496_v45 = vpack.c.bf16 %v489_v43, %v489_v43 }
 0x225   : > { %v553_v46 = vunpack.c.l.b16 %v496_v45 }
 0x227   : > { %v554_v48 = vpack.c.b16 %v553_v46, %v553_v46 }
 0x229   : > { %579 = vrot.lane.b32.xlu2 %v578_v47, %s1305_s28  ;;  %555 = vrot.lane.b32.xlu0 %v554_v48, %s1305_s28 }
 0x22a   : > { %v507_v49 = vpop.permute.xlu1 %506 }
 0x22b   : > { %v513_v50 = vsel %vm508_vm5, %v507_v49, 0 }
 0x22c   : > { %522 = vmatpush.bf16.xpose.msra.mxu1 %v513_v50 }
 0x233   : > { %1092 = vmatmul.msk.bf16.vlgmr.msra.gmra.mxu1 %vm508_vm5, %v494_v33 }
 0x27b   : > { %v532_v51 = vpop.permute.xlu2 %531 }
 0x27c   : > { %v537_v52 = vsel %vm508_vm5, %v532_v51, 0 }
 0x27d   : > { %546 = vmatpush.bf16.xpose.msra.mxu3 %v537_v52 }
 0x283   : > { %v580_v53 = vpop.permute.xlu2 %579 }
 0x284   : > { %1093 = vmatmul.msk.bf16.vlgmr.msra.gmra.mxu3 %vm508_vm5, %v495_v38  ;;  %v585_v54 = vsel %vm508_vm5, %v580_v53, 0 }
 0x285   : > { %594 = vmatpush.bf16.xpose.msrb.mxu0 %v585_v54 }
 0x28c   : > { %1095 = vmatmul.msk.bf16.vlgmr.msrb.gmra.mxu0 %vm508_vm5, %v497_v41 }
 0x29b   : > { %v556_v55 = vpop.permute.xlu0 %555 }
 0x29c   : > { %v561_v56 = vsel %vm508_vm5, %v556_v55, 0 }
 0x29d   : > { %570 = vmatpush.bf16.xpose.msrb.mxu3 %v561_v56 }
 0x2a4   : > { %1094 = vmatmul.msk.bf16.vlgmr.msrb.gmra.mxu3 %vm508_vm5, %v496_v45 }
 0x2b0   : > { %v524_v60 = vpop.f32.mrf.mxu1 }
 0x2b1   : > { %v600_v61 = vmul.f32 0.35355338, %v524_v60 }
 0x2b3   : > { %v606_v62 = vsel %vm502_vm6, -1e+30, %v600_v61 }
 0x2b4   : > { %v610_v63 = vsel %vm508_vm5, %v606_v62, -inf }
 0x2b5   : > { %611 = vmax.xlane.f32.xlu0 %v610_v63 }
 0x2b8   : > { %v526_v1 = vpop.f32.mrf.mxu1 }
 0x2b9   : > { %v750_v1 = vld [vmem:[%s1621_s2 + $0xc] sm:$0xf] }
 0x2c9   : > { %701 = vrot.lane.b32.xlu0 %v554_v48, %s1306_s29 }
 0x2d1   : > { %722 = vrot.lane.b32.xlu0 %v578_v47, %s1306_s29 }
 0x307   : > { %v548_v2 = vpop.f32.mrf.mxu3 }
 0x308   : > { %v601_v3 = vmul.f32 0.35355338, %v548_v2  ;;  %v812_v2 = vsel %vm663_vm7, %v750_v1, 0  ;;  %v1156_v1 = vld [vmem:[%s1607_s6 + $0x18] sm:$0xff] }
 0x309   : > { %v596_v4 = vpop.f32.mrf.mxu0 }
 0x30a   : > { %v607_v5 = vsel %vm502_vm6, -1e+30, %v601_v3  ;;  %v603_v16 = vmul.f32 0.35355338, %v596_v4  ;;  %v747_v3 = vld [vmem:[%s1621_s2] sm:$0xf] }
 0x30b   : > { %v613_v6 = vsel %vm508_vm5, %v607_v5, -inf  ;;  %v755_v4 = vsel %vm663_vm7, %v747_v3, 0  ;;  %v1154_v3 = vld [vmem:[%s1607_s6 + $0x8] sm:$0xff] }
 0x30c   : > { %614 = vmax.xlane.f32.xlu1 %v613_v6  ;;  %v609_v19 = vsel %vm502_vm6, -1e+30, %v603_v16 }
 0x30d   : > { %v619_v20 = vsel %vm508_vm5, %v609_v19, -inf }
 0x30f   : > { %v550_v7 = vpop.f32.mrf.mxu3 }
 0x311   : > { %v598_v9 = vpop.f32.mrf.mxu0 }
 0x327   : > { %v572_v10 = vpop.f32.mrf.mxu3 }
 0x328   : > { %v602_v11 = vmul.f32 0.35355338, %v572_v10  ;;  %v612_v12 = vpop.xlane.xlu0 %611 }
 0x329   : > { %v622_v13 = vsub.f32 %v606_v62, %v612_v12  ;;  %v748_v62 = vld [vmem:[%s1621_s2 + $0x4] sm:$0xf] }
 0x32a   : > { %v608_v14 = vsel %vm502_vm6, -1e+30, %v602_v11  ;;  %v774_v63 = vsel %vm663_vm7, %v748_v62, 0  ;;  %v1158_v62 = vld [vmem:[%s1607_s6 + $0x28] sm:$0xff] }
 0x32b   : > { %v616_v15 = vsel %vm508_vm5, %v608_v14, -inf  ;;  %v626_v17 = vmul.f32 1.442695, %v622_v13 }
 0x32c   : > { %617 = vmax.xlane.f32.xlu2 %v616_v15 }
 0x32d   : > { %1217 = vpow2.f32 %v626_v17 }
 0x32f   : > { %v574_v18 = vpop.f32.mrf.mxu3 }
 0x333   : > { %v1218_v21 = vpop.eup %1217 }
 0x334   : > { %620 = vmax.xlane.f32.xlu2 %v619_v20  ;;  %v634_v23 = vsel %vm508_vm5, %v1218_v21, 0.0 }
 0x33b   : > { %v702_v22 = vpop.permute.xlu0 %701 }
 0x33c   : > { %v707_v24 = vsel %vm663_vm7, %v702_v22, 0  ;;  %635 = vadd.xlane.f32.xlu2 %v634_v23 }
 0x33d   : > { %716 = vmatpush.bf16.msra.mxu3 %v707_v24 }
 0x343   : > { %v723_v25 = vpop.permute.xlu0 %722 }
 0x344   : > { %v728_v26 = vsel %vm663_vm7, %v723_v25, 0 }
 0x345   : > { %737 = vmatpush.bf16.msra.mxu0 %v728_v26 }
 0x349   : > { %821 = vmatpush.bf16.msrb.mxu0 %v812_v2  ;;  %v1155_v2 = vld [vmem:[%s1607_s6 + $0x10] sm:$0xff] }
 0x37f   : > { %v615_v27 = vpop.xlane.xlu1 %614 }
 0x380   : > { %v623_v28 = vsub.f32 %v607_v5, %v615_v27  ;;  %v749_v5 = vld [vmem:[%s1621_s2 + $0x8] sm:$0xf]  ;;  %s1251_s2 = sshra.s32 %s1018_s1, 4  ;;  %s1252_s2 = int_to_ptr.hbm [resolvable:$true] %s1251_s2 }
 0x381   : > { %v793_v6 = vsel %vm663_vm7, %v749_v5, 0  ;;  %v1211_v5 = vld [vmem:[%s1606_s5] ss:$0 sm:$0xff]  ;;  %s1253_s16 = scalar_lea.hbm %s1252_s2, 8  ;;  %p1258_p0 = scmp.lt.s32.totalorder %s1252_s2, %s1613_s12 }
 0x382   : > { %v628_v29 = vmul.f32 1.442695, %v623_v28  ;;  %802 = vmatpush.bf16.msrb.mxu3 %v793_v6  ;;  %p1254_p11 = scmp.ne.s32.totalorder %s1252_s2, %s1253_s16 }
 0x384   : > { %1219 = vpow2.f32 %v628_v29  ;;  %p1255_p12 = pnand %p1254_p11, %p1410_p5 }
 0x386   : > { %p1256_p13 = pneg %p1255_p12 }
 0x38a   : > { %v1220_v30 = vpop.eup %1219 }
 0x38b   : > { %v637_v31 = vsel %vm508_vm5, %v1220_v30, 0.0 }
 0x38c   : > { %638 = vadd.xlane.f32.xlu1 %v637_v31 }
 0x39f   : > { %v618_v32 = vpop.xlane.xlu2 %617 }
 0x3a0   : > { %v624_v35 = vsub.f32 %v608_v14, %v618_v32  ;;  %v1208_v32 = vld [vmem:[%s1604_s3] ss:$0 sm:$0xff] }
 0x3a2   : > { %v630_v38 = vmul.f32 1.442695, %v624_v35 }
 0x3a5   : > { %680 = vrot.lane.b32.xlu1 %v1451_v42, %s1306_s29 }
 0x3a7   : > { %v621_v33 = vpop.xlane.xlu2 %620 }
 0x3a8   : > { %v625_v34 = vsub.f32 %v609_v19, %v621_v33 }
 0x3aa   : > { %v632_v37 = vmul.f32 1.442695, %v625_v34 }
 0x3ac   : > { %1221 = vpow2.f32 %v632_v37 }
 0x3ad   : > { %1223 = vpow2.f32 %v630_v38 }
 0x3af   : > { %v636_v49 = vpop.xlane.xlu2 %635 }
 0x3b2   : > { %v1222_v39 = vpop.eup %1221 }
 0x3b3   : > { %v643_v40 = vsel %vm508_vm5, %v1222_v39, 0.0  ;;  %v1224_v41 = vpop.eup %1223 }
 0x3b4   : > { %644 = vadd.xlane.f32.xlu2 %v643_v40  ;;  %v640_v43 = vsel %vm508_vm5, %v1224_v41, 0.0 }
 0x3bc   : > { %641 = vadd.xlane.f32.xlu2 %v640_v43 }
 0x3d4   : > { %658 = vrot.lane.b32.xlu2 %v1448_v36, %s1306_s29  ;;  %s1081_s29 = sshll.u32 %s402_s0, 3 }
 0x3d5   : > { %s404_s26 = scalar_lea.vmem [#allocation2], %s1081_s29  ;;  %s1257_s29 = scalar_lea.hbm %s1613_s12, 16 }
 0x3d6   : > { %s1015_s28 = sshll.u32 %s404_s26, 4  ;;  %p1259_p1 = scmp.lt.s32.totalorder %s1257_s29, %s1253_s16  ;;  %s1016_s28 = int_to_ptr.vmem [resolvable:$true] %s1015_s28 }
 0x3d8   : > { %p1260_p2 = por %p1259_p1, %p1258_p0 }
 0x3da   : > { %p1261_p3 = pnand %p1260_p2, %p1256_p13 }
 0x3ff   : > { %v639_v44 = vpop.xlane.xlu1 %638 }
 0x400   : > { %1225 = vrcp.f32 %v639_v44 }
 0x406   : > { %v1226_v42 = vpop.eup %1225 }
 0x407   : > { %v651_v45 = vmul.f32 %v1226_v42, %v1220_v30 }
 0x409   : > { %v655_v48 = vpack.c.bf16 %v651_v45, %v651_v45  ;;  %v1152_v45 = vld [vmem:[%s1605_s4 + $0x8] sm:$0xff] }
 0x417   : > { %v681_v46 = vpop.permute.xlu1 %680 }
 0x418   : > { %v686_v47 = vsel %vm663_vm7, %v681_v46, 0  ;;  %v1160_v46 = vld [vmem:[%s1607_s6 + $0x38] sm:$0xff] }
 0x419   : > { %695 = vmatpush.bf16.msra.mxu2 %v686_v47 }
 0x41c   : > { %1097 = vmatmul.msk.bf16.vlgmr.msra.gmra.mxu2 %vm508_vm5, %v655_v48 }
 0x41d   : > { %783 = vmatpush.bf16.msrb.mxu2 %v774_v63  ;;  %v1157_v63 = vld [vmem:[%s1607_s6 + $0x20] sm:$0xff] }
 0x421   : > { %987 = vmatpush.bf16.msra.mxu2 %v1160_v46 }
 0x427   : > { %v645_v50 = vpop.xlane.xlu2 %644 }
 0x428   : > { %1227 = vrcp.f32 %v645_v50 }
 0x429   : > { %1229 = vrcp.f32 %v636_v49  ;;  %v1159_v49 = vld [vmem:[%s1607_s6 + $0x30] sm:$0xff] }
 0x42a   : > { %988 = vmatpush.bf16.msra.mxu2 %v1159_v49 }
 0x42e   : > { %v1228_v51 = vpop.eup %1227  ;;  %989 = vmatpush.bf16.msra.mxu2 %v1158_v62 }
 0x42f   : > { %v653_v52 = vmul.f32 %v1228_v51, %v1222_v39  ;;  %v642_v53 = vpop.xlane.xlu2 %641  ;;  %v1230_v54 = vpop.eup %1229 }
 0x430   : > { %1231 = vrcp.f32 %v642_v53  ;;  %v650_v56 = vmul.f32 %v1230_v54, %v1218_v21 }
 0x431   : > { %v657_v36 = vpack.c.bf16 %v653_v52, %v653_v52 }
 0x432   : > { %v654_v61 = vpack.c.bf16 %v650_v56, %v650_v56  ;;  %990 = vmatpush.bf16.msra.mxu2 %v1157_v63 }
 0x433   : > { %1099 = vmatmul.msk.bf16.vlgmr.msra.gmra.mxu0 %vm508_vm5, %v657_v36 }
 0x436   : > { %v1232_v55 = vpop.eup %1231  ;;  %991 = vmatpush.bf16.msra.mxu2 %v1156_v1 }
 0x437   : > { %v652_v57 = vmul.f32 %v1232_v55, %v1224_v41  ;;  %v659_v58 = vpop.permute.xlu2 %658 }
 0x438   : > { %v665_v59 = vsel %vm663_vm7, %v659_v58, 0  ;;  %v1210_v58 = vld [vmem:[%s1612_s11] ss:$0 sm:$0xff] }
 0x439   : > { %v656_v60 = vpack.c.bf16 %v652_v57, %v652_v57  ;;  %674 = vmatpush.bf16.msrb.mxu1 %v665_v59 }
 0x43a   : > { %992 = vmatpush.bf16.msra.mxu2 %v1155_v2 }
 0x43b   : > { %1098 = vmatmul.msk.bf16.vlgmr.msra.gmra.mxu3 %vm508_vm5, %v656_v60 }
 0x43c   : > { %1096 = vmatmul.msk.bf16.vlgmr.msrb.gmra.mxu1 %vm508_vm5, %v654_v61 }
 0x43d   : > { %764 = vmatpush.bf16.msra.mxu1 %v755_v4  ;;  %v1153_v4 = vld [vmem:[%s1607_s6] sm:$0xff] }
 0x43e   : > { %993 = vmatpush.bf16.msra.mxu2 %v1154_v3 }
 0x441   : > { %902 = vmatpush.bf16.msrb.mxu1 %v1152_v45 }
 0x442   : > { %994 = vmatpush.bf16.msra.mxu2 %v1153_v4 }
 0x49f   : > { %v697_v7 = vpop.f32.mrf.mxu2 }
 0x4a0   : > { %v744_v9 = vpack.c.bf16 %v697_v7, %v697_v7 }
 0x4a2   : > { %1101 = vmatmul.msk.bf16.vlgmr.msrb.gmra.mxu2 %vm508_vm5, %v744_v9 }
 0x4a7   : > { %v699_v10 = vpop.f32.mrf.mxu2 }
 0x4b0   : > { %v739_v11 = vpop.f32.mrf.mxu0 }
 0x4b1   : > { %v746_v12 = vpack.c.bf16 %v739_v11, %v739_v11 }
 0x4b3   : > { %1103 = vmatmul.msk.bf16.vlgmr.msrb.gmra.mxu0 %vm508_vm5, %v746_v12 }
 0x4b8   : > { %v741_v13 = vpop.f32.mrf.mxu0 }
 0x4b9   : > { %v676_v14 = vpop.f32.mrf.mxu1 }
 0x4ba   : > { %v743_v15 = vpack.c.bf16 %v676_v14, %v676_v14 }
 0x4bc   : > { %1100 = vmatmul.msk.bf16.vlgmr.msra.gmra.mxu1 %vm508_vm5, %v743_v15 }
 0x4be   : > { %v718_v16 = vpop.f32.mrf.mxu3 }
 0x4bf   : > { %v745_v17 = vpack.c.bf16 %v718_v16, %v718_v16 }
 0x4c1   : > { %v678_v18 = vpop.f32.mrf.mxu1  ;;  %1102 = vmatmul.msk.bf16.vlgmr.msrb.gmra.mxu3 %vm508_vm5, %v745_v17 }
 0x4c6   : > { %v720_v19 = vpop.f32.mrf.mxu3 }
 0x525   : > { %v785_v20 = vpop.f32.mrf.mxu2 }
 0x526   : > { %v828_v27 = vsel %vm413_vm0, %v785_v20, 0.0  ;;  %v1212_v20 = vld [vmem:[%s1608_s7] ss:$0 sm:$0xff] }
 0x52d   : > { %v787_v21 = vpop.f32.mrf.mxu2 }
 0x530   : > { %v823_v22 = vpop.f32.mrf.mxu0 }
 0x531   : > { %v832_v33 = vsel %vm413_vm0, %v823_v22, 0.0 }
 0x538   : > { %v825_v23 = vpop.f32.mrf.mxu0 }
 0x539   : > { %v766_v24 = vpop.f32.mrf.mxu1 }
 0x53a   : > { %v827_v25 = vsel %vm413_vm0, %v766_v24, 0.0 }
 0x53b   : > { %v829_v28 = vadd.f32 %v828_v27, %v827_v25 }
 0x541   : > { %v768_v26 = vpop.f32.mrf.mxu1 }
 0x544   : > { %v804_v29 = vpop.f32.mrf.mxu3 }
 0x545   : > { %v830_v30 = vsel %vm413_vm0, %v804_v29, 0.0 }
 0x546   : > { %v831_v31 = vadd.f32 %v830_v30, %v829_v28 }
 0x548   : > { %v833_v34 = vadd.f32 %v832_v33, %v831_v31 }
 0x54a   : > { %v838_v35 = vadd.f32 %v1208_v32, %v833_v34 }
 0x54c   : > { %v806_v37 = vpop.f32.mrf.mxu3  ;;  %v1516_v38 = vadd.f32 %v838_v35, %v1425_v0  ;;  %v1151_v0 = vld [vmem:[%s1605_s4] sm:$0xff] }
 0x54d   : > { %903 = vmatpush.bf16.msrb.mxu1 %v1151_v0 }
 0x54e   : > { %v842_v39 = vsel %vm413_vm0, %v1516_v38, 0.0 }
 0x54f   : > { %843 = vadd.xlane.f32.xlu1 %v842_v39 }
 0x5c2   : > { %v844_v40 = vpop.xlane.xlu1 %843 }
 0x5c3   : > { %v845_v41 = vmul.f32 %v844_v40, %v1429_v8 }
 0x5c5   : > { %v846_v43 = vsub.f32 %v1516_v38, %v845_v41 }
 0x5c7   : > { %v847_v44 = vmul.f32 %v846_v43, %v846_v43 }
 0x5c9   : > { %v848_v42 = vsel %vm413_vm0, %v847_v44, 0.0 }
 0x5ca   : > { %849 = vadd.xlane.f32.xlu0 %v848_v42 }
 0x63d   : > { %v850_v47 = vpop.xlane.xlu0 %849 }
 0x63e   : > { %v851_v48 = vmul.f32 %v850_v47, %v1429_v8  ;;  %v1209_v8 = vld [vmem:[%s1611_s10] ss:$0 sm:$0xff] }
 0x640   : > { %v852_v50 = vadd.f32 1e-05, %v851_v48 }
 0x642   : > { %1233 = vrsqrt.f32 %v852_v50  ;;  %vm859_vm9 = vweird.f32 %v852_v50 }
 0x648   : > { %v1234_v51 = vpop.eup %1233 }
 0x649   : > { %v854_v52 = vmul.f32 %v1234_v51, %v852_v50  ;;  %vm860_vm8 = vweird.f32 %v1234_v51 }
 0x64a   : > { %vm861_vm10 = vmor %vm859_vm9, %vm860_vm8 }
 0x64b   : > { %v855_v53 = vmul.f32 %v1234_v51, %v854_v52 }
 0x64d   : > { %v856_v36 = vmul.f32 0.5, %v855_v53 }
 0x64f   : > { %v857_v54 = vsub.f32 1.5, %v856_v36 }
 0x651   : > { %v858_v55 = vmul.f32 %v1234_v51, %v857_v54 }
 0x653   : > { %v862_v56 = vsel %vm861_vm10, %v1234_v51, %v858_v55 }
 0x654   : > { %v863_v57 = vmul.f32 %v862_v56, %v846_v43 }
 0x656   : > { %v867_v59 = vmul.f32 %v1209_v8, %v863_v57 }
 0x658   : > { %v871_v60 = vadd.f32 %v1210_v58, %v867_v59 }
 0x65a   : > { %v872_v61 = vpack.c.bf16 %v871_v60, %v871_v60 }
 0x65c   : > { %1112 = vmatmul.msk.bf16.vlgmr.msrb.gmra.mxu1 %vm413_vm0, %v872_v61 }
 0x6d9   : > { %v905_v6 = vpop.f32.mrf.mxu1 }
 0x6da   : > { %v906_v7 = vadd.f32 %v1211_v5, %v905_v6 }
 0x6dc   : > { %v910_v9 = vmul.f32 0.044715, %v906_v7  ;;  %v909_v16 = vmul.f32 0.5, %v906_v7 }
 0x6de   : > { %v911_v10 = vmul.f32 %v910_v9, %v906_v7 }
 0x6e0   : > { %v912_v11 = vmul.f32 %v911_v10, %v906_v7 }
 0x6e1   : > { %v907_v12 = vpop.f32.mrf.mxu1 }
 0x6e2   : > { %v913_v13 = vadd.f32 %v912_v11, %v906_v7 }
 0x6e4   : > { %v914_v14 = vmul.f32 0.7978846, %v913_v13 }
 0x6e6   : > { %1235 = vtanh.f32 %v914_v14 }
 0x6ec   : > { %v1236_v15 = vpop.eup %1235 }
 0x6ed   : > { %v916_v17 = vadd.f32 1.0, %v1236_v15 }
 0x6ef   : > { %v917_v18 = vmul.f32 %v916_v17, %v909_v16 }
 0x6f1   : > { %v918_v19 = vpack.c.bf16 %v917_v18, %v917_v18 }
 0x6f3   : > { %995 = vmatmul.bf16.vlgmr.msra.gmra.mxu2 %v918_v19 }
 0x776   : > { %v996_v21 = vpop.f32.mrf.mxu2 }
 0x777   : > { %v997_v22 = vadd.f32 %v1212_v20, %v996_v21 }
 0x779   : > { %v1000_v23 = vadd.f32 %v997_v22, %v1516_v38 }
 0x77b   : > { %1001 = vst.msk [vmem:[%s404_s26] sm:$0xff] %vm413_vm0, %v1000_v23 }
 0x77c   : > { %1264 = shalt.err (!%p1261_p3)
}
 0x77d   : > { %1161 = dma.vmem_to_hbm [thread:$0]  (%p1410_p5), %s1016_s28, 128, %s1018_s1, %s1003_s25  }
 0x77e   : > { %v998_v24 = vpop.f32.mrf.mxu2 }
 0x77f PF: > { %p1167_p4 = scmp.ge.s32.totalorder %s1299_s24, 2  ;;  %s1029_s0 = sand.u32 1, %s1287_s21  }
 0x780   : > { %s1030_s20 = scalar_lea.sflag [#allocation3], %s1029_s0 }
 0x781   : > { %p1164_p7 = pnand %p1167_p4, %p1414_p6 }
 0x783   : > { %p1165_p8 = pneg %p1164_p7 }
 0x785   : > { %1282 = dma.done.wait (%p1165_p8), %s1030_s20, 128  }
 0x786   : > { %1284 = vsyncadd (%p1165_p8), %s1030_s20, 4294967168  ;;  %p22_p9 = scmp.ge.s32.totalorder %s1397_s27, 4   ;;  %s1622_s21 = smov %s1291_s22 }
 0x787   : > { %s1623_s22 = smov %s1295_s23  ;;  %s1624_s23 = smov %s1408_s30 }
 0x788   : > { %s1625_s24 = smov %s1397_s27  ;;  %24 = sbr.rel (!%p22_p9) target bundleno = 7 (0x7), region = 103 }
 0x78d   :  { %1036 = vsyncpa [#allocation3], 1 }
 0x78e   :  { %1038 = vsyncpa [#allocation3 + $0x1], 1 }

</bundles_post_ra>
